<compile_context>
chip_gen: v5e
topology: v5e:2x2
jax: 0.10.0
libtpu: 0.0.40
codegen_flags: <defaults>
</compile_context>

<pallas_src>
import functools

import jax
import jax.numpy as jnp
from jax.experimental import pallas as pl
from jax.experimental.pallas import tpu as pltpu


def _tagger_kernel(idx_ref,      # SMEM (Bp*T,) int32: remapped gather rows (scalar prefetch)
                   lab_ref,      # VMEM (R, 1)  int32: labels for this block (-1 == ignore)
                   layer_hbm,    # ANY  (rows_p, Dp): flattened encoder output (+ const -1 row)
                   w_ref,        # VMEM (Dp, Lp): Linear weight (compute dtype), padded cols 0
                   b_ref,        # VMEM (1, Lp) f32: Linear bias, padded cols -1e30
                   out_ref,      # VMEM (SB, 128) f32: per-sentence losses (lane broadcast)
                   gathered,     # VMEM scratch (R, Dp) compute dtype
                   sem,          # DMA semaphore (1,)
                   *, SB, T):
    R = SB * T
    Lp = w_ref.shape[1]
    base = pl.program_id(0) * R

    # ---- token-start gather: R single-row DMAs from the HBM-resident layer ----------
    @pl.loop(0, R)
    def _gather(r):
        row = idx_ref[base + r]
        pltpu.make_async_copy(layer_hbm.at[pl.ds(row, 1)],
                              gathered.at[pl.ds(r, 1)],
                              sem.at[0]).start()

    @pl.loop(0, R)
    def _wait(r):
        # wait descriptor only needs the per-copy shape + semaphore
        pltpu.make_async_copy(layer_hbm.at[pl.ds(0, 1)],
                              gathered.at[pl.ds(r, 1)],
                              sem.at[0]).wait()

    # ---- Linear head (dropout == identity): MXU operands in compute dtype, f32 acc --
    logits = jnp.dot(gathered[...], w_ref[...],
                     preferred_element_type=jnp.float32) + b_ref[...]        # (R, Lp) f32

    # ---- LogSoftmax over labels; padded columns carry -1e30 bias -> exp() == 0 ------
    m = jnp.max(logits, axis=-1, keepdims=True)
    z = logits - m
    logsm = z - jnp.log(jnp.sum(jnp.exp(z), axis=-1, keepdims=True))         # (R, Lp)

    # ---- NLL pick: one-hot compare; ignore_index (-1) rows give all-zero rows -------
    cls = jax.lax.broadcasted_iota(jnp.int32, (R, Lp), 1)
    onehot = (cls == lab_ref[...]).astype(jnp.float32)                       # (R, Lp)

    # ---- per-sentence sums: free leading-dim reshape + lane reduces (no N=1 matmul) -
    picked3 = (logsm * onehot).reshape(SB, T, Lp)
    onehot3 = onehot.reshape(SB, T, Lp)
    num = jnp.sum(jnp.sum(picked3, axis=2), axis=1, keepdims=True)           # (SB, 1)
    den = jnp.sum(jnp.sum(onehot3, axis=2), axis=1, keepdims=True)           # (SB, 1)
    per_loss = -num / jnp.maximum(den, 1.0)                                  # (SB, 1)

    # lane-dense unmasked store: per-sentence loss broadcast across 128 lanes
    out_ref[...] = jnp.broadcast_to(per_loss, out_ref.shape)


def sequence_tagger_loss(gather_idx, true_labels, bert_last_layer, out_w, out_b,
                         *, sentences_per_block=8, compute_dtype=jnp.bfloat16):
    """gather_idx, true_labels: (B, T) int32 (-1 == pad/ignore);
    bert_last_layer: (B, S, D) f32; out_w: (D, L) f32; out_b: (1, L) f32.
    Returns the scalar batch-mean NLL loss. compute_dtype only affects the Linear
    matmul operands (bf16 recommended on v6e/v7x); everything else is f32."""
    B, S, D = bert_last_layer.shape
    T = gather_idx.shape[1]
    L = out_w.shape[1]

    LANES, SUBLANES = 128, 8
    SB = max(SUBLANES, (sentences_per_block // SUBLANES) * SUBLANES)   # sentences / block
    Lp = pl.cdiv(L, LANES) * LANES
    Dp = pl.cdiv(D, LANES) * LANES
    Bp = pl.cdiv(B, SB) * SB
    n_blocks = Bp // SB
    R = SB * T                                                          # token rows / block

    # Flattened encoder output, feature-padded to a lane multiple, plus one constant
    # -1.0 row (index B*S) that padded tokens / padded sentences gather from. The extra
    # feature columns multiply zero weight rows, so their contents never matter.
    rows = B * S
    rows_p = pl.cdiv(rows + 1, SUBLANES) * SUBLANES
    layer_aug = jnp.full((rows_p, Dp), -1.0, compute_dtype)
    layer_aug = layer_aug.at[:rows, :D].set(
        bert_last_layer.reshape(rows, D).astype(compute_dtype))

    # Remapped gather rows (scalar prefetch -> SMEM): valid token -> b*S + idx,
    # padded token / padded sentence -> the constant -1.0 row.
    sent_off = (jnp.arange(B, dtype=jnp.int32) * S)[:, None]
    flat_idx = jnp.where(gather_idx >= 0,
                         gather_idx.astype(jnp.int32) + sent_off,
                         jnp.int32(rows))
    idx_flat = jnp.full((Bp, T), rows, jnp.int32).at[:B].set(flat_idx).reshape(Bp * T)

    lab_col = (jnp.full((Bp, T), -1, jnp.int32)
               .at[:B].set(true_labels.astype(jnp.int32))
               .reshape(Bp * T, 1))

    # Lane-dense label axis (Lp=128): zero weight columns, -1e30 bias columns so the
    # padded logits vanish under exp() and never perturb the log-softmax normalizer.
    w_pad = jnp.zeros((Dp, Lp), compute_dtype).at[:D, :L].set(out_w.astype(compute_dtype))
    b_pad = jnp.full((1, Lp), -1e30, jnp.float32).at[:, :L].set(
        out_b.reshape(1, L).astype(jnp.float32))

    kernel = functools.partial(_tagger_kernel, SB=SB, T=T)

    grid_spec = pltpu.PrefetchScalarGridSpec(
        num_scalar_prefetch=1,
        grid=(n_blocks,),
        in_specs=[
            pl.BlockSpec((R, 1), lambda i, idx: (i, 0)),       # labels for this block
            pl.BlockSpec(memory_space=pl.ANY),                 # encoder output stays in HBM
            pl.BlockSpec((Dp, Lp), lambda i, idx: (0, 0)),     # Linear weight
            pl.BlockSpec((1, Lp), lambda i, idx: (0, 0)),      # Linear bias
        ],
        out_specs=pl.BlockSpec((SB, LANES), lambda i, idx: (i, 0)),
        scratch_shapes=[
            pltpu.VMEM((R, Dp), compute_dtype),                # gathered token reprs
            pltpu.SemaphoreType.DMA((1,)),
        ],
    )

    per_sentence = pl.pallas_call(
        kernel,
        grid_spec=grid_spec,
        out_shape=jax.ShapeDtypeStruct((Bp, LANES), jnp.float32),
        compiler_params=pltpu.CompilerParams(
            dimension_semantics=("parallel",),   # v7x megacore; harmless on v5e/v6e
            vmem_limit_bytes=32 * 1024 * 1024,   # explicit (v5e default scoped is 16 MiB)
        ),
    )(idx_flat, lab_col, layer_aug, w_pad, b_pad)

    # Final batch mean in JAX (kernel stays accumulator-free / per-block independent).
    return jnp.sum(per_sentence[:B, 0]) / B


def _reference_loss(gather_idx, true_labels, layer, w, bias):
    """Pure-JAX reference mirroring the PyTorch forward (eval-mode dropout)."""
    B = layer.shape[0]
    total = jnp.float32(0.0)
    for i in range(B):
        idx = gather_idx[i]
        gathered = jnp.where((idx >= 0)[:, None], layer[i][jnp.clip(idx, 0, None)], -1.0)
        logits = gathered @ w + bias[0]
        logsm = jax.nn.log_softmax(logits, axis=-1)
        lab = true_labels[i]
        valid = (lab >= 0).astype(jnp.float32)
        picked = jnp.take_along_axis(logsm, jnp.clip(lab, 0, None)[:, None], axis=1)[:, 0]
        total += -(picked * valid).sum() / jnp.maximum(valid.sum(), 1.0)
    return total / B


if __name__ == "__main__":
    # batch, wordpiece seq, bert_dim, max tokens, n_labels, vocab
    B, S, D, T, L, V = 12, 16, 32, 8, 3, 100

    key = jax.random.PRNGKey(0)
    k1, k2, k3, k4, k5 = jax.random.split(key, 5)

    # --- synthetic bert_batch -------------------------------------------------
    bert_ids = jax.random.randint(k1, (B, S), 1, V)
    starts = jax.random.bernoulli(k2, 0.4, (B, S)).astype(jnp.int32)
    starts = starts.at[:, 1].set(1)                       # guarantee >= 1 token start per row
    cum = jnp.cumsum(starts, axis=1)
    bert_token_starts = jnp.where(cum <= T, starts, 0)    # cap token count at T

    # gather indices per sentence: positions of token starts, in order, padded with -1
    def _row_gather_idx(row):
        pos = jnp.where(row > 0, jnp.arange(S), S)
        pos = jnp.sort(pos)[:T]
        return jnp.where(pos >= S, -1, pos).astype(jnp.int32)

    gather_idx = jax.vmap(_row_gather_idx)(bert_token_starts)          # (B, T)

    # labels: valid tokens get a label in [0, L), padded positions get ignore_index -1
    lab_rand = jax.random.randint(k3, (B, T), 0, L)
    true_labels = jnp.where(gather_idx >= 0, lab_rand, -1).astype(jnp.int32)

    # --- synthetic deterministic "BERT last layer" (stand-in for the encoder) --
    emb = jax.random.normal(k4, (V, D), jnp.float32) * 0.1
    pos_emb = jax.random.normal(k5, (S, D), jnp.float32) * 0.01
    bert_last_layer = emb[bert_ids] + pos_emb[None, :, :]              # (B, S, D)

    # --- deterministic Linear(bert_dim, n_labels) parameters -------------------
    kw, kb = jax.random.split(jax.random.PRNGKey(42))
    out_w = jax.random.normal(kw, (D, L), jnp.float32) * (1.0 / jnp.sqrt(D))
    out_b = jax.random.normal(kb, (1, L), jnp.float32) * 0.01

    ref = _reference_loss(gather_idx, true_labels, bert_last_layer, out_w, out_b)

    # f32 MXU operands: exact parity with the f32 reference.
    loss_f32 = sequence_tagger_loss(gather_idx, true_labels, bert_last_layer,
                                    out_w, out_b, compute_dtype=jnp.float32)
    loss_f32 = jax.block_until_ready(loss_f32)
    if not jnp.allclose(loss_f32, ref, rtol=1e-5, atol=1e-5):
        raise AssertionError(f"f32 mismatch: pallas={loss_f32}, ref={ref}")

    # bf16 MXU operands (native on v6e/v7x), f32 accumulation + f32 softmax/NLL.
    loss_bf16 = sequence_tagger_loss(gather_idx, true_labels, bert_last_layer,
                                     out_w, out_b, compute_dtype=jnp.bfloat16)
    loss_bf16 = jax.block_until_ready(loss_bf16)
    if not jnp.allclose(loss_bf16, ref, rtol=5e-2, atol=5e-2):
        raise AssertionError(f"bf16 mismatch: pallas={loss_bf16}, ref={ref}")

    print("KERNEL_OK")
</pallas_src>

<mosaic_0001>
module attributes {stable_mosaic.version = 11 : i64} {
  func.func @_tagger_kernel(%arg0: i32, %arg1: memref<128xi32, #tpu.memory_space<smem>>, %arg2: memref<64x1xi32, #tpu.memory_space<vmem>>, %arg3: memref<200x128xf32, #tpu.memory_space<any>>, %arg4: memref<128x128xf32, #tpu.memory_space<vmem>>, %arg5: memref<1x128xf32, #tpu.memory_space<vmem>>, %arg6: memref<8x128xf32, #tpu.memory_space<vmem>>, %arg7: memref<64x128xf32, #tpu.memory_space<vmem>>, %arg8: memref<1x!tpu.dma_semaphore, #tpu.memory_space<semaphore_mem>>) attributes {dimension_semantics = [#tpu.dimension_semantics<parallel>], iteration_bounds = array<i64: 2>, scalar_prefetch = 1 : i64, scratch_operands = 2 : i64, tpu.core_type = #tpu.core_type<tc>, window_params = [{transform_indices = @transform_0, window_bounds = array<i64: 64, 1>}, {}, {pipeline_mode = #tpu.pipeline_mode<synchronous>, transform_indices = @transform_2, window_bounds = array<i64: 128, 128>}, {pipeline_mode = #tpu.pipeline_mode<synchronous>, transform_indices = @transform_3, window_bounds = array<i64: 1, 128>}, {transform_indices = @transform_4, window_bounds = array<i64: 8, 128>}]} {
    %c64_i32 = arith.constant 64 : i32
    %0 = arith.muli %arg0, %c64_i32 : i32
    %c0_i32 = arith.constant 0 : i32
    %c64_i32_0 = arith.constant 64 : i32
    %1 = arith.addi %c0_i32, %c64_i32_0 : i32
    %c1_i32 = arith.constant 1 : i32
    scf.for %arg9 = %c0_i32 to %1 step %c1_i32  : i32 {
      %c1_i32_23 = arith.constant 1 : i32
      %42 = arith.muli %arg9, %c1_i32_23 : i32
      %c0_i32_24 = arith.constant 0 : i32
      %43 = arith.addi %c0_i32_24, %42 : i32
      %44 = arith.addi %0, %43 : i32
      %45 = arith.index_cast %44 : i32 to index
      %46 = memref.load %arg1[%45] : memref<128xi32, #tpu.memory_space<smem>>
      %c0_i32_25 = arith.constant 0 : i32
      %c0_i32_26 = arith.constant 0 : i32
      %47 = tpu.memref_slice %arg3[%46, %c0_i32_26] : memref<200x128xf32, #tpu.memory_space<any>> -> memref<1x128xf32, #tpu.memory_space<any>>
      %c0_i32_27 = arith.constant 0 : i32
      %48 = tpu.memref_slice %arg7[%43, %c0_i32_27] : memref<64x128xf32, #tpu.memory_space<vmem>> -> memref<1x128xf32, #tpu.memory_space<vmem>>
      %49 = tpu.memref_slice %arg8[%c0_i32_25] : memref<1x!tpu.dma_semaphore, #tpu.memory_space<semaphore_mem>> -> memref<1x!tpu.dma_semaphore, #tpu.memory_space<semaphore_mem>>
      %50 = tpu.memref_squeeze %49 : memref<1x!tpu.dma_semaphore, #tpu.memory_space<semaphore_mem>> -> memref<!tpu.dma_semaphore, #tpu.memory_space<semaphore_mem>>
      tpu.enqueue_dma source(%47 : memref<1x128xf32, #tpu.memory_space<any>>) target(%48 : memref<1x128xf32, #tpu.memory_space<vmem>>) target_semaphore(%50 : memref<!tpu.dma_semaphore, #tpu.memory_space<semaphore_mem>>)
    }
    %c64_i32_1 = arith.constant 64 : i32
    %c0_i32_2 = arith.constant 0 : i32
    %c64_i32_3 = arith.constant 64 : i32
    %2 = arith.addi %c0_i32_2, %c64_i32_3 : i32
    %c1_i32_4 = arith.constant 1 : i32
    scf.for %arg9 = %c0_i32_2 to %2 step %c1_i32_4  : i32 {
      %c1_i32_23 = arith.constant 1 : i32
      %42 = arith.muli %arg9, %c1_i32_23 : i32
      %c0_i32_24 = arith.constant 0 : i32
      %43 = arith.addi %c0_i32_24, %42 : i32
      %c0_i32_25 = arith.constant 0 : i32
      %c0_i32_26 = arith.constant 0 : i32
      %c0_i32_27 = arith.constant 0 : i32
      %44 = tpu.memref_slice %arg3[%c0_i32_26, %c0_i32_27] : memref<200x128xf32, #tpu.memory_space<any>> -> memref<1x128xf32, #tpu.memory_space<any>>
      %c0_i32_28 = arith.constant 0 : i32
      %45 = tpu.memref_slice %arg7[%43, %c0_i32_28] : memref<64x128xf32, #tpu.memory_space<vmem>> -> memref<1x128xf32, #tpu.memory_space<vmem>>
      %46 = tpu.memref_slice %arg8[%c0_i32_25] : memref<1x!tpu.dma_semaphore, #tpu.memory_space<semaphore_mem>> -> memref<1x!tpu.dma_semaphore, #tpu.memory_space<semaphore_mem>>
      %47 = tpu.memref_squeeze %46 : memref<1x!tpu.dma_semaphore, #tpu.memory_space<semaphore_mem>> -> memref<!tpu.dma_semaphore, #tpu.memory_space<semaphore_mem>>
      tpu.wait_dma2 semaphore(%47 : memref<!tpu.dma_semaphore, #tpu.memory_space<semaphore_mem>>) src(%44 : memref<1x128xf32, #tpu.memory_space<any>>) dst(%45 : memref<1x128xf32, #tpu.memory_space<vmem>>)
    }
    %c64_i32_5 = arith.constant 64 : i32
    %c0 = arith.constant 0 : index
    %c0_6 = arith.constant 0 : index
    %3 = vector.load %arg7[%c0, %c0_6] : memref<64x128xf32, #tpu.memory_space<vmem>>, vector<64x128xf32>
    %c0_7 = arith.constant 0 : index
    %c0_8 = arith.constant 0 : index
    %4 = vector.load %arg4[%c0_7, %c0_8] : memref<128x128xf32, #tpu.memory_space<vmem>>, vector<128x128xf32>
    %cst = arith.constant dense<0.000000e+00> : vector<64x128xf32>
    %5 = tpu.matmul %3, %4, %cst {dimension_numbers = #tpu.dot_dimension_numbers<[1], [0], [0], [1], [0, 0, 1, 1], [], []>} : vector<64x128xf32>, vector<128x128xf32>, vector<64x128xf32> -> vector<64x128xf32>
    %c0_9 = arith.constant 0 : index
    %c0_10 = arith.constant 0 : index
    %6 = vector.load %arg5[%c0_9, %c0_10] : memref<1x128xf32, #tpu.memory_space<vmem>>, vector<1x128xf32>
    %7 = vector.broadcast %6 : vector<1x128xf32> to vector<64x128xf32>
    %8 = arith.addf %5, %7 : vector<64x128xf32>
    %cst_11 = arith.constant dense<0xFF800000> : vector<64xf32>
    %9 = vector.multi_reduction <maximumf>, %8, %cst_11 [1] : vector<64x128xf32> to vector<64xf32>
    %10 = vector.shape_cast %9 : vector<64xf32> to vector<64x1xf32>
    %11 = vector.broadcast %10 : vector<64x1xf32> to vector<64x128xf32>
    %12 = arith.subf %8, %11 : vector<64x128xf32>
    %13 = math.exp %12 : vector<64x128xf32>
    %cst_12 = arith.constant dense<0.000000e+00> : vector<64xf32>
    %14 = vector.multi_reduction <add>, %13, %cst_12 [1] : vector<64x128xf32> to vector<64xf32>
    %15 = vector.shape_cast %14 : vector<64xf32> to vector<64x1xf32>
    %16 = math.log %15 : vector<64x1xf32>
    %17 = vector.broadcast %16 : vector<64x1xf32> to vector<64x128xf32>
    %18 = arith.subf %12, %17 : vector<64x128xf32>
    %19 = tpu.iota {dimensions = array<i32: 1>} : vector<64x128xi32>
    %c0_13 = arith.constant 0 : index
    %c0_14 = arith.constant 0 : index
    %20 = vector.load %arg2[%c0_13, %c0_14] : memref<64x1xi32, #tpu.memory_space<vmem>>, vector<64x1xi32>
    %21 = vector.broadcast %20 : vector<64x1xi32> to vector<64x128xi32>
    %22 = arith.cmpi eq, %19, %21 : vector<64x128xi32>
    %23 = arith.extui %22 : vector<64x128xi1> to vector<64x128xi32>
    %24 = arith.sitofp %23 : vector<64x128xi32> to vector<64x128xf32>
    %25 = arith.mulf %18, %24 : vector<64x128xf32>
    %26 = vector.shape_cast %25 : vector<64x128xf32> to vector<8x8x128xf32>
    %27 = vector.shape_cast %24 : vector<64x128xf32> to vector<8x8x128xf32>
    %cst_15 = arith.constant dense<0.000000e+00> : vector<8x8xf32>
    %28 = vector.multi_reduction <add>, %26, %cst_15 [2] : vector<8x8x128xf32> to vector<8x8xf32>
    %cst_16 = arith.constant dense<0.000000e+00> : vector<8xf32>
    %29 = vector.multi_reduction <add>, %28, %cst_16 [1] : vector<8x8xf32> to vector<8xf32>
    %30 = vector.shape_cast %29 : vector<8xf32> to vector<8x1xf32>
    %cst_17 = arith.constant dense<0.000000e+00> : vector<8x8xf32>
    %31 = vector.multi_reduction <add>, %27, %cst_17 [2] : vector<8x8x128xf32> to vector<8x8xf32>
    %cst_18 = arith.constant dense<0.000000e+00> : vector<8xf32>
    %32 = vector.multi_reduction <add>, %31, %cst_18 [1] : vector<8x8xf32> to vector<8xf32>
    %33 = vector.shape_cast %32 : vector<8xf32> to vector<8x1xf32>
    %cst_19 = arith.constant 0.000000e+00 : f32
    %34 = vector.broadcast %cst_19 : f32 to vector<8x1xf32>
    %35 = arith.subf %34, %30 : vector<8x1xf32>
    %cst_20 = arith.constant 1.000000e+00 : f32
    %36 = vector.broadcast %cst_20 : f32 to vector<8x1xf32>
    %37 = arith.maximumf %33, %36 : vector<8x1xf32>
    %38 = arith.divf %35, %37 : vector<8x1xf32>
    %39 = vector.shape_cast %38 : vector<8x1xf32> to vector<8x1xf32>
    %40 = vector.broadcast %39 : vector<8x1xf32> to vector<8x128xf32>
    %c0_21 = arith.constant 0 : index
    %c0_22 = arith.constant 0 : index
    %41 = vector.load %arg6[%c0_21, %c0_22] : memref<8x128xf32, #tpu.memory_space<vmem>>, vector<8x128xf32>
    tpu.vector_store %arg6[%c0_21, %c0_22], %40 {strides = array<i32>} : memref<8x128xf32, #tpu.memory_space<vmem>>, vector<8x128xf32>,
    return
  }
  func.func @transform_0(%arg0: i32, %arg1: memref<128xi32, #tpu.memory_space<smem>>) -> (i32, i32) {
    %c0_i32 = arith.constant 0 : i32
    %c0_i32_0 = arith.constant 0 : i32
    return %arg0, %c0_i32 : i32, i32
  }
  func.func @transform_2(%arg0: i32, %arg1: memref<128xi32, #tpu.memory_space<smem>>) -> (i32, i32) {
    %c0_i32 = arith.constant 0 : i32
    %c0_i32_0 = arith.constant 0 : i32
    %c0_i32_1 = arith.constant 0 : i32
    return %c0_i32, %c0_i32_0 : i32, i32
  }
  func.func @transform_3(%arg0: i32, %arg1: memref<128xi32, #tpu.memory_space<smem>>) -> (i32, i32) {
    %c0_i32 = arith.constant 0 : i32
    %c0_i32_0 = arith.constant 0 : i32
    %c0_i32_1 = arith.constant 0 : i32
    return %c0_i32, %c0_i32_0 : i32, i32
  }
  func.func @transform_4(%arg0: i32, %arg1: memref<128xi32, #tpu.memory_space<smem>>) -> (i32, i32) {
    %c0_i32 = arith.constant 0 : i32
    %c0_i32_0 = arith.constant 0 : i32
    return %arg0, %c0_i32 : i32, i32
  }
}

</mosaic_0001>

<bundles_post_ra>
// kernel: tpu_custom_call.1
= control target key start
LH: loop header
LB: loop body
LE: loop exit
PB: predicated region body
PF: predicated region fallthrough
CT: control target
= control target key end

     0   :  { %s919_s21 = smov [#allocation5]   ;;  %s1226_s0 = inlined_call_operand.vmem [shape: s32[128], index: 0, kind: input, shape index: {}]   ;;  %s1227_s1 = inlined_call_operand.vmem [shape: s32[128,1], index: 1, kind: input, shape index: {}]   ;;  %s1228_s2 = inlined_call_operand.hbm [shape: f32[200,128], index: 2, kind: input, shape index: {}]   ;;  %s1229_s3 = inlined_call_operand.vmem [shape: f32[128,128], index: 3, kind: input, shape index: {}]   ;;  %s1230_s4 = inlined_call_operand.vmem [shape: f32[1,128], index: 4, kind: input, shape index: {}]   ;;  %s1231_s5 = inlined_call_operand.hbm [shape: f32[16,128], index: 5, kind: output, shape index: {}]  }
   0x1   :  { %1234 = sst [smem:[#allocation16_spill]] %s1227_s1  ;;  %s11_s20 = sshll.u32 %s1226_s0, 4  ;;  %s12_s20 = int_to_ptr.vmem [resolvable:$true] %s11_s20 }
   0x2   :  { %14 = dma.vmem_to_smem %s12_s20, 16, %s919_s21, [#allocation4] }
   0x3   :  { %887 = dma.done.wait [#allocation4], 16 }
   0x4   :  { %888 = vsyncadd [#allocation4], 4294967280 }
   0x5   :  { %17 = sfence }
   0x6   :  { %18 = vsyncpa [#allocation7], 0 }
   0x7   :  { %20 = vsyncpa [#allocation7 + $0x1], 0  ;;  %s956_s22 = smov 0   ;;  %s958_s23 = smov 0  }
   0x8   :  { %s960_s24 = smov 0   ;;  %s962_s25 = smov 0  }
   0x9 LB: > { %s977_s0 = sadd.s32 4294967295, %s909_s25   ;;  %s634_s26 = sadd.s32 4294967294, %s909_s25   ;;  %s909_s25 = sphi %s962_s25, %s1247_s25   ;;  %s905_s24 = sphi %s960_s24, %s1246_s24   ;;  %s901_s23 = sphi %s958_s23, %s1245_s23   ;;  %s897_s22 = sphi %s956_s22, %s1244_s22  }
   0xa   : > { %1235 = sst [smem:[#allocation15_spill]] %s977_s0  ;;  %s981_s27 = sadd.s32 1, %s909_s25  }
   0xb   : > { %s101_s28 = sadd.s32 1, %s905_s24  ;;  %s98_s29 = ssub.s32 %s909_s25, %s981_s27 }
   0xc   : > { %p111_p0 = scmp.ne.s32.totalorder %s905_s24, %s901_s23  ;;  %p99_p1 = scmp.eq.s32.totalorder %s98_s29, 0 }
   0xd   : > { %p112_p2 = scmp.eq.s32.totalorder %s977_s0, 1  ;;  %p117_p3 = scmp.ne.s32.totalorder %s901_s23, %s897_s22 }
   0xe   : > { %p118_p4 = scmp.eq.s32.totalorder %s634_s26, 1  ;;  %p637_p7 = scmp.ge.s32.totalorder %s909_s25, 1 }
   0xf   : > { %s992_s30 = scalar_select %p99_p1, %s905_s24, %s101_s28  }
  0x10   : > { %p994_p5 = por %p112_p2, %p111_p0  ;;  %p998_p6 = por %p118_p4, %p117_p3 }
  0x11   : > { %p151_p8 = scmp.lt.s32.totalorder %s909_s25, 3 }
  0x13   : > { %p152_p9 = pnand %p637_p7, %p151_p8 }
  0x14   : > { %s1232_s8 = sand.u32 (!%p152_p9), 1, %s901_s23   ;;  %s1006_s9 = sshll.u32 (!%p152_p9), %s977_s0, 3 }
  0x15   : > { %155 = sbr.rel (%p152_p9) target bundleno = 771 (0x303), region = 32  ;;  %s1010_s10 = sshll.u32 (!%p152_p9), %s1232_s8, 3 }
  0x16   : > { %p176_p10 = scmp.lt.s32.totalorder (!%p152_p9), %s1006_s9, 15  ;;  %s1238_s1 = sld [smem:[#allocation16_spill]] (!%p152_p9) }
  0x17   : > { %s1021_s18 = smov (!%p152_p9), 0  }
  0x1a   : > { %s177_s12 = scalar_select %p176_p10, %s1006_s9, 15 }
  0x1c   : > { %s640_s13 = sshll.u32 %s177_s12, 3 }
  0x1d   : > { %s1018_s16 = scalar_lea.vmem %s1238_s1, %s640_s13 }
  0x1e LB: >> { %s1239_s0 = sld [smem:[#allocation15_spill]]  ;;  %s191_s21 = scalar_lea.vmem [#allocation2], %s913_s18  ;;  %s913_s18 = sphi %s1021_s18, %s187_s18  }
  0x1f   : >> { %s201_s26 = sshll.u32 %s191_s21, 4  ;;  %s202_s26 = int_to_ptr.vmem [resolvable:$true] %s201_s26 }
  0x24   : >> { %s1240_s11 = sshll.u32 %s1239_s0, 6  ;;  %s815_s0 = scalar_lea.hbm %s1228_s2, 200 }
  0x25   : >> { %s188_s19 = sadd.s32 %s913_s18, %s1240_s11 }
  0x26   : >> { %s189_s20 = sld [smem:[#allocation5 + %s188_s19]] }
  0x2c   : >> { %s190_s12 = scalar_lea.hbm %s1228_s2, %s189_s20 }
  0x2d   : >> { %s199_s13 = sshll.u32 %s190_s12, 4  ;;  %s200_s13 = int_to_ptr.hbm [resolvable:$true] %s199_s13 }
  0x2e   : >> { %s811_s14 = sshra.s32 %s200_s13, 4  ;;  %s812_s14 = int_to_ptr.hbm [resolvable:$true] %s811_s14 }
  0x2f   : >> { %s813_s15 = scalar_lea.hbm %s812_s14, 1  ;;  %p816_p12 = scmp.lt.s32.totalorder %s812_s14, %s1228_s2 }
  0x30   : >> { %p814_p11 = scmp.ne.s32.totalorder %s812_s14, %s813_s15  ;;  %p817_p13 = scmp.lt.s32.totalorder %s815_s0, %s813_s15 }
  0x32   : >> { %p818_p0 = por %p817_p13, %p816_p12 }
  0x34   : >> { %p819_p1 = pnand %p818_p0, %p814_p11 }
  0x36   : >> { %822 = shalt.err (!%p819_p1)  }
  0x37   : >> { %s823_s19 = sshra.s32 %s202_s26, 4  ;;  %s920_s21 = smov [#allocation2]   ;;  %s824_s19 = int_to_ptr.vmem [resolvable:$true] %s823_s19 }
  0x38   : >> { %s825_s20 = scalar_lea.vmem %s824_s19, 1  ;;  %s827_s28 = scalar_lea.vmem %s920_s21, 64 }
  0x39   : >> { %p826_p2 = scmp.ne.s32.totalorder %s824_s19, %s825_s20  ;;  %p828_p3 = scmp.lt.s32.totalorder %s824_s19, [#allocation2] }
  0x3a   : >> { %p829_p4 = scmp.lt.s32.totalorder %s827_s28, %s825_s20 }
  0x3c   : >> { %p830_p7 = por %p829_p4, %p828_p3 }
  0x3e   : >> { %p831_p8 = pnand %p830_p7, %p826_p2 }
  0x40   : >> { %834 = shalt.err (!%p831_p8)  }
  0x41   : >> { %204 = dma.hbm_to_vmem [thread:$0]  %s200_s13, 16, %s202_s26, [#allocation3] }
  0x42   : >> { %s187_s18 = sadd.s32 1, %s913_s18  }
  0x43   : >> { %p184_p9 = scmp.ge.s32.totalorder %s187_s18, 64  }
  0x44   : > { %s915_s1 = smov (%p184_p9), 0  }
  0x45   : > { %186 = sbr.rel (!%p184_p9) target bundleno = 30 (0x1e), region = 87 }
  0x4a LB: >> { %889 = dma.done.wait [#allocation3], 16  ;;  %s917_s1 = sphi %s915_s1, %s210_s1  }
  0x4b   : >> { %890 = vsyncadd [#allocation3], 4294967280  ;;  %s210_s1 = sadd.s32 1, %s917_s1  }
  0x4c   : >> { %p207_p10 = scmp.ge.s32.totalorder %s210_s1, 64  }
  0x4d   : > { %v237_v0 = vld [vmem:[%s1229_s3 + $0x78] sm:$0xff] (%p207_p10)  ;;  %v236_v1 = vld [vmem:[%s1229_s3 + $0x70] sm:$0xff] (%p207_p10)  ;;  %v235_v2 = vld [vmem:[%s1229_s3 + $0x68] sm:$0xff] (%p207_p10)  ;;  %v921_v21 = vmov (%p207_p10), 0   ;;  %vm461_vm8 = vcmask (%p207_p10), 1041409   ;;  %vm463_vm9 = vcmask (%p207_p10), 1042434   ;;  %s552_s17 = scalar_lea.hbm (%p207_p10), %s1231_s5, %s1006_s9 }
  0x4e   : > { %209 = sbr.rel (!%p207_p10) target bundleno = 74 (0x4a), region = 98  ;;  %242 = vmatpush.msra.mxu0 (%p207_p10), %v237_v0  ;;  %655 = vmatpush.msra.mxu1 (%p207_p10), %v237_v0  ;;  %v234_v3 = vld [vmem:[%s1229_s3 + $0x60] sm:$0xff] (%p207_p10)  ;;  %v233_v4 = vld [vmem:[%s1229_s3 + $0x58] sm:$0xff] (%p207_p10)  ;;  %v232_v5 = vld [vmem:[%s1229_s3 + $0x50] sm:$0xff] (%p207_p10)  ;;  %vm465_vm10 = vcmask (%p207_p10), 1043459   ;;  %vm467_vm11 = vcmask (%p207_p10), 1044484  }
  0x4f   : > { %656 = vmatpush.msra.mxu2 (%p207_p10), %v237_v0  ;;  %657 = vmatpush.msra.mxu3 (%p207_p10), %v237_v0  ;;  %v231_v6 = vld [vmem:[%s1229_s3 + $0x48] sm:$0xff] (%p207_p10)  ;;  %v230_v7 = vld [vmem:[%s1229_s3 + $0x40] sm:$0xff] (%p207_p10)  ;;  %v229_v8 = vld [vmem:[%s1229_s3 + $0x38] sm:$0xff] (%p207_p10)  ;;  %vm469_vm12 = vcmask (%p207_p10), 1045509   ;;  %vm471_vm13 = vcmask (%p207_p10), 1046534   ;;  %vm473_vm14 = vcmask (%p207_p10), 1047559  }
  0x50   : > { %243 = vmatpush.msra.mxu0 (%p207_p10), %v236_v1  ;;  %658 = vmatpush.msra.mxu1 (%p207_p10), %v236_v1  ;;  %v228_v9 = vld [vmem:[%s1229_s3 + $0x30] sm:$0xff] (%p207_p10)  ;;  %v227_v10 = vld [vmem:[%s1229_s3 + $0x28] sm:$0xff] (%p207_p10)  ;;  %v226_v11 = vld [vmem:[%s1229_s3 + $0x20] sm:$0xff] (%p207_p10)  ;;  %vm476_vm15 = vcmask (%p207_p10), 64512   ;;  %s1241_s18 = scalar_lea.vmem (%p207_p10), [#allocation6], %s1010_s10  ;;  %s556_s29 = sshll.u32 (%p207_p10), %s552_s17, 4  ;;  %s557_s29 = int_to_ptr.hbm [resolvable:$true] %s556_s29 }
  0x51   : > { %659 = vmatpush.msra.mxu2 (%p207_p10), %v236_v1  ;;  %660 = vmatpush.msra.mxu3 (%p207_p10), %v236_v1  ;;  %v225_v12 = vld [vmem:[%s1229_s3 + $0x18] sm:$0xff] (%p207_p10)  ;;  %v224_v13 = vld [vmem:[%s1229_s3 + $0x10] sm:$0xff] (%p207_p10)  ;;  %v223_v14 = vld [vmem:[%s1229_s3 + $0x8] sm:$0xff] (%p207_p10)  ;;  %s554_s26 = sshll.u32 (%p207_p10), %s1241_s18, 4  ;;  %s1242_s12 = smov (%p207_p10), %s1241_s18  ;;  %s555_s26 = int_to_ptr.vmem [resolvable:$true] %s554_s26 }
  0x52   : > { %244 = vmatpush.msra.mxu0 (%p207_p10), %v235_v2  ;;  %661 = vmatpush.msra.mxu1 (%p207_p10), %v235_v2  ;;  %v222_v15 = vld [vmem:[%s1229_s3] sm:$0xff] (%p207_p10)  ;;  %v216_v17 = vld [vmem:[#allocation2 + $0x10] sm:$0xff] (%p207_p10)  ;;  %v366_v23 = vld [vmem:[%s1018_s16 + $0x8] sm:$0xff] (%p207_p10)  ;;  %s1243_s13 = sand.u32 (%p207_p10), 1, %s901_s23   ;;  %s849_s15 = sshra.s32 (%p207_p10), %s557_s29, 4  ;;  %s850_s15 = int_to_ptr.hbm [resolvable:$true] %s849_s15 }
  0x53   : > { %662 = vmatpush.msra.mxu2 %v235_v2  ;;  %663 = vmatpush.msra.mxu3 %v235_v2  ;;  %v214_v16 = vld [vmem:[#allocation2] sm:$0xff]  ;;  %v220_v19 = vld [vmem:[#allocation2 + $0x30] sm:$0xff]  ;;  %v215_v24 = vld [vmem:[#allocation2 + $0x8] sm:$0xff]  ;;  %s542_s14 = scalar_lea.sflag [#allocation7], %s1243_s13  ;;  %s851_s9 = scalar_lea.hbm %s850_s15, 8 }
  0x54   : > { %245 = vmatpush.msra.mxu0 %v234_v3  ;;  %664 = vmatpush.msra.mxu1 %v234_v3  ;;  %v218_v18 = vld [vmem:[#allocation2 + $0x20] sm:$0xff]  ;;  %v367_v22 = vld [vmem:[%s1018_s16 + $0x10] sm:$0xff]  ;;  %v217_v25 = vld [vmem:[#allocation2 + $0x18] sm:$0xff]  ;;  %p852_p11 = scmp.ne.s32.totalorder %s850_s15, %s851_s9  ;;  %s855_s21 = scalar_lea.hbm %s1231_s5, 16 }
  0x55   : > { %665 = vmatpush.msra.mxu2 %v234_v3  ;;  %666 = vmatpush.msra.mxu3 %v234_v3  ;;  %v365_v20 = vld [vmem:[%s1018_s16] sm:$0xff]  ;;  %v219_v26 = vld [vmem:[#allocation2 + $0x28] sm:$0xff]  ;;  %v221_v27 = vld [vmem:[#allocation2 + $0x38] sm:$0xff]  ;;  %p856_p0 = scmp.lt.s32.totalorder %s850_s15, %s1231_s5  ;;  %p857_p1 = scmp.lt.s32.totalorder %s855_s21, %s851_s9 }
  0x56   : > { %246 = vmatpush.msra.mxu0 %v233_v4  ;;  %667 = vmatpush.msra.mxu1 %v233_v4  ;;  %v368_v28 = vld [vmem:[%s1018_s16 + $0x18] sm:$0xff]  ;;  %v369_v29 = vld [vmem:[%s1018_s16 + $0x20] sm:$0xff]  ;;  %v371_v47 = vld [vmem:[%s1018_s16 + $0x30] sm:$0xff]  ;;  %p853_p12 = pnand %p852_p11, %p994_p5 }
  0x57   : > { %668 = vmatpush.msra.mxu2 %v233_v4  ;;  %669 = vmatpush.msra.mxu3 %v233_v4  ;;  %v764_v30 = vld [vmem:[%s1230_s4] ss:$0 sm:$0xff]  ;;  %v372_v48 = vld [vmem:[%s1018_s16 + $0x38] sm:$0xff]  ;;  %v370_v49 = vld [vmem:[%s1018_s16 + $0x28] sm:$0xff]  ;;  %p858_p2 = por %p857_p1, %p856_p0 }
  0x58   : > { %247 = vmatpush.msra.mxu0 %v232_v5  ;;  %670 = vmatpush.msra.mxu1 %v232_v5  ;;  %p854_p13 = pneg %p853_p12 }
  0x59   : > { %671 = vmatpush.msra.mxu2 %v232_v5  ;;  %672 = vmatpush.msra.mxu3 %v232_v5 }
  0x5a   : > { %248 = vmatpush.msra.mxu0 %v231_v6  ;;  %673 = vmatpush.msra.mxu1 %v231_v6  ;;  %p859_p3 = pnand %p858_p2, %p854_p13 }
  0x5b   : > { %674 = vmatpush.msra.mxu2 %v231_v6  ;;  %675 = vmatpush.msra.mxu3 %v231_v6 }
  0x5c   : > { %249 = vmatpush.msra.mxu0 %v230_v7  ;;  %676 = vmatpush.msra.mxu1 %v230_v7 }
  0x5d   : > { %677 = vmatpush.msra.mxu2 %v230_v7  ;;  %678 = vmatpush.msra.mxu3 %v230_v7 }
  0x5e   : > { %250 = vmatpush.msra.mxu0 %v229_v8  ;;  %679 = vmatpush.msra.mxu1 %v229_v8 }
  0x5f   : > { %680 = vmatpush.msra.mxu2 %v229_v8  ;;  %681 = vmatpush.msra.mxu3 %v229_v8 }
  0x60   : > { %251 = vmatpush.msra.mxu0 %v228_v9  ;;  %682 = vmatpush.msra.mxu1 %v228_v9 }
  0x61   : > { %683 = vmatpush.msra.mxu2 %v228_v9  ;;  %684 = vmatpush.msra.mxu3 %v228_v9 }
  0x62   : > { %252 = vmatpush.msra.mxu0 %v227_v10  ;;  %685 = vmatpush.msra.mxu1 %v227_v10 }
  0x63   : > { %686 = vmatpush.msra.mxu2 %v227_v10  ;;  %687 = vmatpush.msra.mxu3 %v227_v10 }
  0x64   : > { %253 = vmatpush.msra.mxu0 %v226_v11  ;;  %688 = vmatpush.msra.mxu1 %v226_v11 }
  0x65   : > { %689 = vmatpush.msra.mxu2 %v226_v11  ;;  %690 = vmatpush.msra.mxu3 %v226_v11 }
  0x66   : > { %254 = vmatpush.msra.mxu0 %v225_v12  ;;  %691 = vmatpush.msra.mxu1 %v225_v12 }
  0x67   : > { %692 = vmatpush.msra.mxu2 %v225_v12  ;;  %693 = vmatpush.msra.mxu3 %v225_v12 }
  0x68   : > { %255 = vmatpush.msra.mxu0 %v224_v13  ;;  %694 = vmatpush.msra.mxu1 %v224_v13 }
  0x69   : > { %695 = vmatpush.msra.mxu2 %v224_v13  ;;  %696 = vmatpush.msra.mxu3 %v224_v13 }
  0x6a   : > { %256 = vmatpush.msra.mxu0 %v223_v14  ;;  %697 = vmatpush.msra.mxu1 %v223_v14 }
  0x6b   : > { %698 = vmatpush.msra.mxu2 %v223_v14  ;;  %699 = vmatpush.msra.mxu3 %v223_v14  ;;  %v363_v14 = vlaneseq }
  0x6c   : > { %257 = vmatpush.msra.mxu0 %v222_v15  ;;  %700 = vmatpush.msra.mxu1 %v222_v15 }
  0x6d   : > { %701 = vmatpush.msra.mxu2 %v222_v15  ;;  %258 = vmatmul.f32.vlgmr.msra.gmra.mxu0 %v214_v16 }
  0x6e   : > { %264 = vmatmul.f32.vlgmr.msra.gmra.mxu1 %v216_v17  ;;  %270 = vmatmul.f32.vlgmr.msra.gmra.mxu2 %v218_v18  ;;  %v1128_v17 = vand.u32 127, %v363_v14 }
  0x6f   : > { %702 = vmatpush.msra.mxu3 %v222_v15  ;;  %761 = vset.pattern.permute.xlu2 %v921_v21 }
  0x70   : > { %276 = vmatmul.f32.vlgmr.msra.gmra.mxu3 %v220_v19  ;;  %374 = vperm.xlu2 %761, %v365_v20  }
  0x71   : > { %763 = vset.pattern.permute.xlu1 %v921_v21  ;;  %762 = vset.pattern.permute.xlu0 %v921_v21 }
  0x72   : > { %380 = vperm.xlu1 %763, %v367_v22   ;;  %377 = vperm.xlu0 %762, %v366_v23   ;;  %v922_v22 = vmov 0.0  }
  0x75   : > { %261 = vmatmul.f32.gmra.mxu0 %v215_v24 }
  0x76   : > { %267 = vmatmul.f32.gmra.mxu1 %v217_v25  ;;  %273 = vmatmul.f32.gmra.mxu2 %v219_v26 }
  0x78   : > { %279 = vmatmul.f32.gmra.mxu3 %v221_v27  ;;  %383 = vperm.xlu2 %761, %v368_v28  }
  0x80   : > { %386 = vperm.xlu2 %761, %v369_v29  }
  0xca   : > { %v375_v50 = vpop.permute.xlu2 %374 }
  0xcb   : > { %vm397_vm0 = vcmp.eq.s32.totalorder %v1128_v17, %v375_v50 }
  0xcc   : > { %v642_v23 = vsel %vm397_vm0, 1.0, %v922_v22 }
  0xd2   : > { %v1104_v51 = vpop.permute.xlu2 %383 }
  0xd3   : > { %vm400_vm5 = vcmp.eq.s32.totalorder %v1128_v17, %v1104_v51 }
  0xda   : > { %v387_v54 = vpop.permute.xlu2 %386 }
  0xdb   : > { %vm401_vm2 = vcmp.eq.s32.totalorder %v1128_v17, %v387_v54 }
  0xdc   : > { %v646_v28 = vsel %vm401_vm2, 1.0, %v922_v22 }
  0xe4   : > { %v1106_v52 = vpop.permute.xlu0 %377  ;;  %v381_v53 = vpop.permute.xlu1 %380 }
  0xe5   : > { %vm399_vm1 = vcmp.eq.s32.totalorder %v1128_v17, %v381_v53  ;;  %vm398_vm3 = vcmp.eq.s32.totalorder %v1128_v17, %v1106_v52 }
  0xe6   : > { %v644_v26 = vsel %vm399_vm1, 1.0, %v922_v22 }
  0xea   : > { %v259_v31 = vpop.f32.mrf.mxu0 }
  0xeb   : > { %v260_v32 = vadd.f32 %v764_v30, %v259_v31  ;;  %v265_v33 = vpop.f32.mrf.mxu1 }
  0xec   : > { %v266_v34 = vadd.f32 %v764_v30, %v265_v33 }
  0xed   : > { %283 = vmax.xlane.f32.xlu0 %v260_v32 }
  0xee   : > { %287 = vmax.xlane.f32.xlu1 %v266_v34 }
  0xf1   : > { %v271_v35 = vpop.f32.mrf.mxu2 }
  0xf2   : > { %v272_v36 = vadd.f32 %v764_v30, %v271_v35  ;;  %v262_v41 = vpop.f32.mrf.mxu0 }
  0xf3   : > { %v268_v37 = vpop.f32.mrf.mxu1  ;;  %v277_v38 = vpop.f32.mrf.mxu3  ;;  %v263_v44 = vadd.f32 %v764_v30, %v262_v41 }
  0xf4   : > { %v269_v39 = vadd.f32 %v764_v30, %v268_v37  ;;  %v1098_v40 = vadd.f32 %v764_v30, %v277_v38  ;;  %291 = vmax.xlane.f32.xlu2 %v272_v36 }
  0xf6   : > { %289 = vmax.xlane.f32.xlu1 %v269_v39  ;;  %295 = vmax.xlane.f32.xlu0 %v1098_v40 }
  0xf9   : > { %v274_v42 = vpop.f32.mrf.mxu2 }
  0xfa   : > { %v275_v43 = vadd.f32 %v764_v30, %v274_v42 }
  0xfb   : > { %v280_v45 = vpop.f32.mrf.mxu3 }
  0xfc   : > { %v281_v46 = vadd.f32 %v764_v30, %v280_v45  ;;  %293 = vmax.xlane.f32.xlu2 %v275_v43  ;;  %v643_v30 = vsel %vm398_vm3, 1.0, %v922_v22 }
  0xfe   : > { %297 = vmax.xlane.f32.xlu1 %v281_v46  ;;  %285 = vmax.xlane.f32.xlu0 %v263_v44 }
 0x112   : > { %392 = vperm.xlu0 %762, %v371_v47  }
 0x114   : > { %395 = vperm.xlu2 %761, %v372_v48  }
 0x117   : > { %389 = vperm.xlu1 %763, %v370_v49  }
 0x160   : > { %v284_v55 = vpop.xlane.xlu0 %283 }
 0x161   : > { %v288_v56 = vpop.xlane.xlu1 %287  ;;  %v1108_v57 = vsub.f32 %v260_v32, %v284_v55  ;;  %v645_v32 = vsel %vm400_vm5, 1.0, %v922_v22 }
 0x162   : > { %v1110_v58 = vsub.f32 %v266_v34, %v288_v56 }
 0x163   : > { %v307_v59 = vmul.f32 1.442695, %v1108_v57 }
 0x164   : > { %v311_v60 = vmul.f32 1.442695, %v1110_v58 }
 0x165   : > { %765 = vpow2.f32 %v307_v59 }
 0x166   : > { %767 = vpow2.f32 %v311_v60 }
 0x167   : > { %v292_v61 = vpop.xlane.xlu2 %291 }
 0x168   : > { %v1114_v62 = vsub.f32 %v272_v36, %v292_v61 }
 0x169   : > { %v290_v63 = vpop.xlane.xlu1 %289  ;;  %v296_v0 = vpop.xlane.xlu0 %295 }
 0x16a   : > { %v315_v1 = vmul.f32 1.442695, %v1114_v62  ;;  %v1126_v15 = vsub.f32 %v269_v39, %v290_v63  ;;  %v1133_v21 = vsub.f32 %v1098_v40, %v296_v0 }
 0x16b   : > { %v766_v2 = vpop.eup %765 }
 0x16c   : > { %v768_v3 = vpop.eup %767  ;;  %769 = vpow2.f32 %v315_v1  ;;  %323 = vadd.xlane.f32.xlu2 %v766_v2  ;;  %v313_v18 = vmul.f32 1.442695, %v1126_v15  ;;  %v319_v24 = vmul.f32 1.442695, %v1133_v21 }
 0x16d   : > { %327 = vadd.xlane.f32.xlu0 %v768_v3 }
 0x16f   : > { %v294_v4 = vpop.xlane.xlu2 %293 }
 0x170   : > { %v1117_v5 = vsub.f32 %v275_v43, %v294_v4 }
 0x171   : > { %v298_v6 = vpop.xlane.xlu1 %297  ;;  %v286_v7 = vpop.xlane.xlu0 %285 }
 0x172   : > { %v770_v8 = vpop.eup %769  ;;  %v317_v9 = vmul.f32 1.442695, %v1117_v5  ;;  %v1120_v10 = vsub.f32 %v281_v46, %v298_v6  ;;  %v1122_v11 = vsub.f32 %v263_v44, %v286_v7 }
 0x173   : > { %331 = vadd.xlane.f32.xlu1 %v770_v8 }
 0x174   : > { %771 = vpow2.f32 %v317_v9  ;;  %v321_v12 = vmul.f32 1.442695, %v1120_v10  ;;  %v309_v13 = vmul.f32 1.442695, %v1122_v11 }
 0x176   : > { %773 = vpow2.f32 %v321_v12 }
 0x177   : > { %775 = vpow2.f32 %v309_v13  ;;  %v396_v35 = vpop.permute.xlu2 %395 }
 0x178   : > { %777 = vpow2.f32 %v313_v18  ;;  %vm404_vm7 = vcmp.eq.s32.totalorder %v1128_v17, %v396_v35 }
 0x179   : > { %779 = vpow2.f32 %v319_v24  ;;  %v649_v36 = vsel %vm404_vm7, 1.0, %v922_v22 }
 0x17a   : > { %v772_v16 = vpop.eup %771 }
 0x17b   : > { %333 = vadd.xlane.f32.xlu0 %v772_v16 }
 0x17c   : > { %v774_v19 = vpop.eup %773 }
 0x17d   : > { %v776_v20 = vpop.eup %775  ;;  %337 = vadd.xlane.f32.xlu2 %v774_v19 }
 0x17e   : > { %325 = vadd.xlane.f32.xlu1 %v776_v20  ;;  %v778_v25 = vpop.eup %777 }
 0x17f   : > { %v780_v27 = vpop.eup %779 }
 0x183   : > { %480 = vadd.xlane.f32.xlu0 %v642_v23 }
 0x184   : > { %v393_v29 = vpop.permute.xlu0 %392 }
 0x185   : > { %vm403_vm4 = vcmp.eq.s32.totalorder %v1128_v17, %v393_v29 }
 0x186   : > { %329 = vadd.xlane.f32.xlu1 %v778_v25  ;;  %v1143_v31 = vsel %vm403_vm4, 1.0, %v922_v22 }
 0x189   : > { %v390_v33 = vpop.permute.xlu1 %389 }
 0x18a   : > { %vm402_vm6 = vcmp.eq.s32.totalorder %v1128_v17, %v390_v33 }
 0x18b   : > { %484 = vadd.xlane.f32.xlu0 %v644_v26  ;;  %v647_v34 = vsel %vm402_vm6, 1.0, %v922_v22 }
 0x18e   : > { %335 = vadd.xlane.f32.xlu1 %v780_v27 }
 0x193   : > { %488 = vadd.xlane.f32.xlu0 %v646_v28 }
 0x196   : > { %482 = vadd.xlane.f32.xlu1 %v643_v30 }
 0x19b   : > { %492 = vadd.xlane.f32.xlu0 %v1143_v31 }
 0x19e   : > { %486 = vadd.xlane.f32.xlu1 %v645_v32 }
 0x1a6   : > { %490 = vadd.xlane.f32.xlu1 %v647_v34 }
 0x1ae   : > { %494 = vadd.xlane.f32.xlu1 %v649_v36 }
 0x1df   : > { %v324_v37 = vpop.xlane.xlu2 %323 }
 0x1e0   : > { %781 = vlog2.f32 %v324_v37  ;;  %v328_v38 = vpop.xlane.xlu0 %327 }
 0x1e1   : > { %783 = vlog2.f32 %v328_v38 }
 0x1e6   : > { %v782_v39 = vpop.eup %781  ;;  %v332_v40 = vpop.xlane.xlu1 %331 }
 0x1e7   : > { %v340_v41 = vmul.f32 0.6931472, %v782_v39  ;;  %785 = vlog2.f32 %v332_v40  ;;  %v784_v42 = vpop.eup %783 }
 0x1e8   : > { %v344_v44 = vmul.f32 0.6931472, %v784_v42 }
 0x1e9   : > { %v355_v43 = vsub.f32 %v1108_v57, %v340_v41 }
 0x1ea   : > { %v357_v49 = vsub.f32 %v1110_v58, %v344_v44 }
 0x1eb   : > { %v421_v45 = vmul.f32 %v642_v23, %v355_v43 }
 0x1ec   : > { %v423_v54 = vmul.f32 %v644_v26, %v357_v49 }
 0x1ed   : > { %v786_v46 = vpop.eup %785  ;;  %429 = vadd.xlane.f32.xlu0 %v421_v45 }
 0x1ee   : > { %v348_v47 = vmul.f32 0.6931472, %v786_v46  ;;  %v334_v48 = vpop.xlane.xlu0 %333 }
 0x1ef   : > { %787 = vlog2.f32 %v334_v48 }
 0x1f0   : > { %v359_v50 = vsub.f32 %v1114_v62, %v348_v47  ;;  %v338_v51 = vpop.xlane.xlu2 %337 }
 0x1f1   : > { %v326_v52 = vpop.xlane.xlu1 %325 }
 0x1f2   : > { %789 = vlog2.f32 %v326_v52  ;;  %v425_v53 = vmul.f32 %v646_v28, %v359_v50 }
 0x1f3   : > { %791 = vlog2.f32 %v338_v51 }
 0x1f4   : > { %437 = vadd.xlane.f32.xlu1 %v425_v53 }
 0x1f5   : > { %v788_v55 = vpop.eup %787  ;;  %433 = vadd.xlane.f32.xlu0 %v423_v54 }
 0x1f6   : > { %v350_v56 = vmul.f32 0.6931472, %v788_v55  ;;  %v481_v3 = vpop.xlane.xlu0 %480 }
 0x1f8   : > { %v790_v57 = vpop.eup %789  ;;  %v360_v59 = vsub.f32 %v1117_v5, %v350_v56 }
 0x1f9   : > { %v342_v60 = vmul.f32 0.6931472, %v790_v57  ;;  %v330_v61 = vpop.xlane.xlu1 %329  ;;  %v792_v63 = vpop.eup %791 }
 0x1fa   : > { %793 = vlog2.f32 %v330_v61  ;;  %v426_v62 = vmul.f32 %v647_v34, %v360_v59  ;;  %v354_v0 = vmul.f32 0.6931472, %v792_v63 }
 0x1fb   : > { %v356_v58 = vsub.f32 %v1122_v11, %v342_v60 }
 0x1fc   : > { %v362_v7 = vsub.f32 %v1120_v10, %v354_v0 }
 0x1fd   : > { %v422_v1 = vmul.f32 %v643_v30, %v356_v58  ;;  %439 = vadd.xlane.f32.xlu0 %v426_v62 }
 0x1fe   : > { %v428_v8 = vmul.f32 %v649_v36, %v362_v7  ;;  %v485_v14 = vpop.xlane.xlu0 %484 }
 0x1ff   : > { %431 = vadd.xlane.f32.xlu1 %v422_v1  ;;  %v506_v24 = vperm.slane %v485_v14, %v1128_v17 }
 0x200   : > { %v794_v2 = vpop.eup %793 }
 0x201   : > { %v346_v4 = vmul.f32 0.6931472, %v794_v2  ;;  %v336_v6 = vpop.xlane.xlu1 %335 }
 0x202   : > { %795 = vlog2.f32 %v336_v6 }
 0x203   : > { %v358_v5 = vsub.f32 %v1126_v15, %v346_v4  ;;  %v504_v15 = vperm.slane %v481_v3, %v1128_v17 }
 0x205   : > { %v424_v9 = vmul.f32 %v645_v32, %v358_v5 }
 0x206   : > { %v489_v20 = vpop.xlane.xlu0 %488 }
 0x207   : > { %443 = vadd.xlane.f32.xlu1 %v428_v8  ;;  %435 = vadd.xlane.f32.xlu2 %v424_v9  ;;  %v508_v28 = vperm.slane %v489_v20, %v1128_v17 }
 0x208   : > { %v796_v12 = vpop.eup %795 }
 0x209   : > { %v352_v11 = vmul.f32 0.6931472, %v796_v12  ;;  %v483_v13 = vpop.xlane.xlu1 %482 }
 0x20a   : > { %v505_v10 = vperm.slane %v483_v13, %v1128_v17 }
 0x20b   : > { %v361_v16 = vsub.f32 %v1133_v21, %v352_v11 }
 0x20c   : > { %v512_v22 = vsel %vm461_vm8, %v505_v10, %v504_v15 }
 0x20d   : > { %v427_v18 = vmul.f32 %v1143_v31, %v361_v16  ;;  %v513_v21 = vsel %vm463_vm9, %v506_v24, %v512_v22 }
 0x20e   : > { %v493_v29 = vpop.xlane.xlu0 %492 }
 0x20f   : > { %441 = vadd.xlane.f32.xlu2 %v427_v18  ;;  %v510_v32 = vperm.slane %v493_v29, %v1128_v17 }
 0x211   : > { %v487_v19 = vpop.xlane.xlu1 %486 }
 0x212   : > { %v507_v23 = vperm.slane %v487_v19, %v1128_v17 }
 0x214   : > { %v514_v26 = vsel %vm465_vm10, %v507_v23, %v513_v21 }
 0x215   : > { %v515_v30 = vsel %vm467_vm11, %v508_v28, %v514_v26 }
 0x219   : > { %v491_v25 = vpop.xlane.xlu1 %490 }
 0x21a   : > { %v509_v27 = vperm.slane %v491_v25, %v1128_v17 }
 0x21c   : > { %v516_v31 = vsel %vm469_vm12, %v509_v27, %v515_v30 }
 0x21d   : > { %v517_v35 = vsel %vm471_vm13, %v510_v32, %v516_v31 }
 0x221   : > { %v495_v33 = vpop.xlane.xlu1 %494 }
 0x222   : > { %v511_v34 = vperm.slane %v495_v33, %v1128_v17 }
 0x224   : > { %v518_v36 = vsel %vm473_vm14, %v511_v34, %v517_v35 }
 0x225   : > { %v520_v37 = vsel %vm476_vm15, %v518_v36, 0.0 }
 0x226   : > { %521 = vadd.xlane.f32.xlu0 %v520_v37 }
 0x260   : > { %v430_v38 = vpop.xlane.xlu0 %429 }
 0x261   : > { %v453_v43 = vperm.slane %v430_v38, %v1128_v17 }
 0x267   : > { %v438_v39 = vpop.xlane.xlu1 %437 }
 0x268   : > { %v434_v41 = vpop.xlane.xlu0 %433  ;;  %v457_v50 = vperm.slane %v438_v39, %v1128_v17 }
 0x269   : > { %v455_v46 = vperm.slane %v434_v41, %v1128_v17 }
 0x270   : > { %v440_v51 = vpop.xlane.xlu0 %439 }
 0x271   : > { %v458_v54 = vperm.slane %v440_v51, %v1128_v17 }
 0x272   : > { %v432_v40 = vpop.xlane.xlu1 %431 }
 0x273   : > { %v454_v42 = vperm.slane %v432_v40, %v1128_v17 }
 0x275   : > { %v462_v44 = vsel %vm461_vm8, %v454_v42, %v453_v43 }
 0x276   : > { %v464_v48 = vsel %vm463_vm9, %v455_v46, %v462_v44 }
 0x27a   : > { %v436_v45 = vpop.xlane.xlu2 %435  ;;  %v444_v53 = vpop.xlane.xlu1 %443 }
 0x27b   : > { %v456_v47 = vperm.slane %v436_v45, %v1128_v17  ;;  %v460_v57 = vperm.slane %v444_v53, %v1128_v17 }
 0x27d   : > { %v466_v49 = vsel %vm465_vm10, %v456_v47, %v464_v48 }
 0x27e   : > { %v468_v52 = vsel %vm467_vm11, %v457_v50, %v466_v49 }
 0x27f   : > { %v470_v59 = vsel %vm469_vm12, %v458_v54, %v468_v52 }
 0x282   : > { %v442_v55 = vpop.xlane.xlu2 %441 }
 0x283   : > { %v459_v56 = vperm.slane %v442_v55, %v1128_v17 }
 0x285   : > { %v472_v60 = vsel %vm471_vm13, %v459_v56, %v470_v59 }
 0x286   : > { %v474_v61 = vsel %vm473_vm14, %v460_v57, %v472_v60 }
 0x287   : > { %v477_v63 = vsel %vm476_vm15, %v474_v61, 0.0 }
 0x288   : > { %478 = vadd.xlane.f32.xlu2 %v477_v63 }
 0x299   : > { %v522_v58 = vpop.xlane.xlu0 %521 }
 0x29a   : > { %v524_v62 = vmax.f32 %v522_v58, 1.0 }
 0x29c   : > { %797 = vrcp.f32 %v524_v62  ;;  %v536_v17 = vand.u32 2147483648, %v524_v62  ;;  %vm530_vm1 = vweird.f32 %v524_v62  ;;  %v534_v6 = vand.u32 2147483647, %v524_v62 }
 0x29e   : > { %v537_v8 = vor.u32 1.1754944e-38, %v536_v17  ;;  %vm535_vm3 = vcmp.eq.f32.partialorder %v534_v6, 8.507059e+37 }
 0x2a2   : > { %v798_v0 = vpop.eup %797 }
 0x2a3   : > { %v526_v1 = vmul.f32 %v798_v0, %v524_v62  ;;  %vm531_vm0 = vweird.f32 %v798_v0 }
 0x2a4   : > { %vm532_vm2 = vmor %vm530_vm1, %vm531_vm0 }
 0x2a5   : > { %v527_v2 = vsub.f32 1.0, %v526_v1 }
 0x2a7   : > { %v528_v3 = vmul.f32 %v798_v0, %v527_v2 }
 0x2a9   : > { %v529_v4 = vadd.f32 %v798_v0, %v528_v3 }
 0x2ab   : > { %v533_v7 = vsel %vm532_vm2, %v798_v0, %v529_v4 }
 0x2ac   : > { %v538_v12 = vsel %vm535_vm3, %v537_v8, %v533_v7 }
 0x2fb   : > { %v479_v5 = vpop.xlane.xlu2 %478 }
 0x2fc   : > { %v523_v9 = vsub.f32 0.0, %v479_v5 }
 0x2fe   : > { %v539_v11 = vmul.f32 %v538_v12, %v523_v9 }
 0x300   : > { %540 = vst [vmem:[%s1242_s12] sm:$0xff] %v539_v11 }
 0x301   : > { %862 = shalt.err (!%p859_p3)
}
 0x302   : > { %703 = dma.vmem_to_hbm [thread:$0]  (%p994_p5), %s555_s26, 128, %s557_s29, %s542_s14  }
 0x303 PF: > { %p709_p4 = scmp.ge.s32.totalorder %s909_s25, 2  ;;  %s568_s10 = sand.u32 1, %s897_s22  }
 0x304   : > { %s569_s0 = scalar_lea.sflag [#allocation7], %s568_s10 }
 0x305   : > { %p706_p7 = pnand %p709_p4, %p998_p6 }
 0x307   : > { %p707_p8 = pneg %p706_p7 }
 0x309   : > { %892 = dma.done.wait (%p707_p8), %s569_s0, 128  }
 0x30a   : > { %894 = vsyncadd (%p707_p8), %s569_s0, 4294967168  ;;  %p23_p9 = scmp.ge.s32.totalorder %s981_s27, 4   ;;  %s1244_s22 = smov %s901_s23 }
 0x30b   : > { %s1245_s23 = smov %s905_s24  ;;  %s1246_s24 = smov %s992_s30 }
 0x30c   : > { %s1247_s25 = smov %s981_s27  ;;  %25 = sbr.rel (!%p23_p9) target bundleno = 9 (0x9), region = 109 }
 0x311   :  { %575 = vsyncpa [#allocation7], 1 }
 0x312   :  { %577 = vsyncpa [#allocation7 + $0x1], 1 }
 0x313   :  { %578 = vsyncmov [#allocation3] }
 0x316   :  { %s579_s25 = vpop.sfrf %578 }
 0x317   :  { %p654_p5 = scmp.ne.s32.totalorder %s579_s25, 0 }
 0x319   :  { %583 = shalt.err (%p654_p5)  }

</bundles_post_ra>
